<compile_context>
chip_gen: v5e
topology: v5e:2x2
jax: 0.10.0
libtpu: 0.0.40
codegen_flags: <defaults>
</compile_context>

<pallas_src>
import functools

import jax
import jax.numpy as jnp
from jax.experimental import pallas as pl
from jax.experimental.pallas import tpu as pltpu


def _mlp_kernel(x_ref, w1_ref, b1_ref, w2_ref, b2_ref, o_ref, *, compute_dtype):
    # Two MXU matmuls (f32 accumulation) + f32 bias adds + ReLU on one [tm, D] tile.
    x = x_ref[...].astype(compute_dtype)          # in-kernel cast: no extra HBM pass
    h = jnp.dot(x, w1_ref[...], preferred_element_type=jnp.float32)
    h = jnp.maximum(h + b1_ref[...], 0.0)         # bias + ReLU in f32 (VPU)
    h = h.astype(compute_dtype)                   # narrow operand for 2nd MXU pass
    o = jnp.dot(h, w2_ref[...], preferred_element_type=jnp.float32)
    o_ref[...] = (o + b2_ref[...]).astype(o_ref.dtype)


def _round_up(a: int, b: int) -> int:
    return (a + b - 1) // b * b


def _pick_row_tile(M: int, tm_max: int) -> int:
    """Row-tile size.

    - tiny M: one (16-aligned) tile covering the whole batch (bf16 sublane pack)
    - otherwise: a multiple of 256 (full MXU pass on v6e/v7x), capped at tm_max,
      requiring >= 2 grid steps (v7x has 2 TensorCores) and <= ~25% of the
      padded compute wasted on the ragged trailing tile.
    """
    if M <= 256:
        return _round_up(max(M, 1), 16)
    best, t = 256, 512
    while t <= tm_max:
        steps = pl.cdiv(M, t)
        waste = steps * t - M
        if steps >= 2 and 4 * waste <= steps * t:
            best = t
        t *= 2
    return best


def diff_dmc_forward(x, w1, b1, w2, b2, *, tm=1024,
                     compute_dtype=jnp.bfloat16, out_dtype=None):
    """Forward pass of DiffDMC's Linear -> ReLU -> Linear.

    x:  [..., D]            (any leading shape)
    w1: [D, D], b1: [D]     (PyTorch layout: W is [out, in])
    w2: [D, D], b2: [D]

    out_dtype defaults to x.dtype (module semantics); pass jnp.bfloat16 when the
    consumer tolerates it to cut the dominant output HBM stream in half.
    """
    *lead, D = x.shape
    out_dtype = x.dtype if out_dtype is None else out_dtype

    x2d = x.reshape(-1, D)
    M = x2d.shape[0]

    tm_eff = _pick_row_tile(M, tm)
    grid = (pl.cdiv(M, tm_eff),)     # ragged trailing block: masked, no padding copy

    # Host-side glue only on the tiny weight tensors: transpose nn.Linear's
    # [out, in] to [in, out] and cast to the MXU compute dtype; biases stay f32.
    w1_t = w1.T.astype(compute_dtype)
    w2_t = w2.T.astype(compute_dtype)
    b1_r = b1.reshape(1, D).astype(jnp.float32)
    b2_r = b2.reshape(1, D).astype(jnp.float32)

    # Advisory cost estimate so XLA schedules surrounding ops sensibly.
    bytes_accessed = (
        M * D * x2d.dtype.itemsize                       # x stream in (f32)
        + M * D * jnp.dtype(out_dtype).itemsize          # output stream
        + 2 * D * D * jnp.dtype(compute_dtype).itemsize  # weights (fetched once)
        + 2 * D * 4                                      # biases (f32)
    )
    cost = pl.CostEstimate(flops=4 * M * D * D,
                           transcendentals=0,
                           bytes_accessed=bytes_accessed)

    kernel = functools.partial(_mlp_kernel, compute_dtype=compute_dtype)

    # TODO(synk): if this MLP is evaluated many times per DMC step with tiny M,
    # a weight-stationary cross-call variant (weights kept resident in VMEM)
    # would avoid re-fetching the 256 KiB of weights on every call.
    out = pl.pallas_call(
        kernel,
        out_shape=jax.ShapeDtypeStruct((M, D), out_dtype),
        grid_spec=pltpu.PrefetchScalarGridSpec(
            num_scalar_prefetch=0,
            grid=grid,
            in_specs=[
                pl.BlockSpec((tm_eff, D), lambda i: (i, 0)),   # x tile (streamed)
                pl.BlockSpec((D, D), lambda i: (0, 0)),        # W1^T (resident)
                pl.BlockSpec((1, D), lambda i: (0, 0)),        # b1
                pl.BlockSpec((D, D), lambda i: (0, 0)),        # W2^T (resident)
                pl.BlockSpec((1, D), lambda i: (0, 0)),        # b2
            ],
            out_specs=pl.BlockSpec((tm_eff, D), lambda i: (i, 0)),
        ),
        compiler_params=pltpu.CompilerParams(
            dimension_semantics=("parallel",),
        ),
        cost_estimate=cost,
    )(x2d, w1_t, b1_r, w2_t, b2_r)

    return out.reshape(*lead, D)


def init_params(key, latent_dim=256, dtype=jnp.float32):
    """Deterministic synthetic init matching nn.Linear(latent_dim, latent_dim) x2."""
    k1, k2, k3, k4 = jax.random.split(key, 4)
    bound = 1.0 / jnp.sqrt(latent_dim)
    # PyTorch shape convention: W is [out, in]; bias is [out]
    w1 = jax.random.uniform(k1, (latent_dim, latent_dim), dtype, -bound, bound)
    b1 = jax.random.uniform(k2, (latent_dim,), dtype, -bound, bound)
    w2 = jax.random.uniform(k3, (latent_dim, latent_dim), dtype, -bound, bound)
    b2 = jax.random.uniform(k4, (latent_dim,), dtype, -bound, bound)
    return w1, b1, w2, b2


def reference_forward(x, w1, b1, w2, b2):
    h = jnp.maximum(x @ w1.T + b1, 0.0)
    return h @ w2.T + b2


if __name__ == "__main__":
    latent_dim = 256
    key = jax.random.PRNGKey(0)
    kx1, kx2, kp = jax.random.split(key, 3)

    w1, b1, w2, b2 = init_params(kp, latent_dim)

    # Tiny batch: 2*8 = 16 rows -> single grid step, whole-batch tile.
    x_small = jax.random.normal(kx1, (2, 8, latent_dim), jnp.float32)
    # Ragged batch: 3*100 = 300 rows -> tile 256, 2 grid steps, masked last tile.
    x_ragged = jax.random.normal(kx2, (3, 100, latent_dim), jnp.float32)

    for x in (x_small, x_ragged):
        out = jax.block_until_ready(diff_dmc_forward(x, w1, b1, w2, b2))
        ref = reference_forward(x, w1, b1, w2, b2)
        assert out.shape == x.shape
        # bf16 matmul operands with f32 accumulation -> loosened tolerance vs the
        # pure-f32 reference (expected abs error ~1e-2 at these magnitudes).
        assert jnp.allclose(out, ref, atol=5e-2, rtol=5e-2), "mismatch vs reference"

    print("KERNEL_OK")
</pallas_src>

<mosaic_0001>
module attributes {stable_mosaic.version = 11 : i64} {
  func.func @_mlp_kernel(%arg0: i32, %arg1: memref<16x256xf32, #tpu.memory_space<vmem>>, %arg2: memref<256x256xbf16, #tpu.memory_space<vmem>>, %arg3: memref<1x256xf32, #tpu.memory_space<vmem>>, %arg4: memref<256x256xbf16, #tpu.memory_space<vmem>>, %arg5: memref<1x256xf32, #tpu.memory_space<vmem>>, %arg6: memref<16x256xf32, #tpu.memory_space<vmem>>) attributes {dimension_semantics = [#tpu.dimension_semantics<parallel>], iteration_bounds = array<i64: 1>, scalar_prefetch = 0 : i64, scratch_operands = 0 : i64, tpu.core_type = #tpu.core_type<tc>, window_params = [{transform_indices = @transform_0, window_bounds = array<i64: 16, 256>}, {pipeline_mode = #tpu.pipeline_mode<synchronous>, transform_indices = @transform_1, window_bounds = array<i64: 256, 256>}, {pipeline_mode = #tpu.pipeline_mode<synchronous>, transform_indices = @transform_2, window_bounds = array<i64: 1, 256>}, {pipeline_mode = #tpu.pipeline_mode<synchronous>, transform_indices = @transform_3, window_bounds = array<i64: 256, 256>}, {pipeline_mode = #tpu.pipeline_mode<synchronous>, transform_indices = @transform_4, window_bounds = array<i64: 1, 256>}, {transform_indices = @transform_5, window_bounds = array<i64: 16, 256>}]} {
    %c0 = arith.constant 0 : index
    %c0_0 = arith.constant 0 : index
    %0 = vector.load %arg1[%c0, %c0_0] : memref<16x256xf32, #tpu.memory_space<vmem>>, vector<16x256xf32>
    %1 = arith.truncf %0 : vector<16x256xf32> to vector<16x256xbf16>
    %c0_1 = arith.constant 0 : index
    %c0_2 = arith.constant 0 : index
    %2 = vector.load %arg2[%c0_1, %c0_2] : memref<256x256xbf16, #tpu.memory_space<vmem>>, vector<256x256xbf16>
    %cst = arith.constant dense<0.000000e+00> : vector<16x256xf32>
    %3 = tpu.matmul %1, %2, %cst {dimension_numbers = #tpu.dot_dimension_numbers<[1], [0], [0], [1], [0, 0, 1, 1], [], []>} : vector<16x256xbf16>, vector<256x256xbf16>, vector<16x256xf32> -> vector<16x256xf32>
    %c0_3 = arith.constant 0 : index
    %c0_4 = arith.constant 0 : index
    %4 = vector.load %arg3[%c0_3, %c0_4] : memref<1x256xf32, #tpu.memory_space<vmem>>, vector<1x256xf32>
    %5 = vector.broadcast %4 : vector<1x256xf32> to vector<16x256xf32>
    %6 = arith.addf %3, %5 : vector<16x256xf32>
    %cst_5 = arith.constant 0.000000e+00 : f32
    %7 = vector.broadcast %cst_5 : f32 to vector<16x256xf32>
    %8 = arith.maximumf %6, %7 : vector<16x256xf32>
    %9 = arith.truncf %8 : vector<16x256xf32> to vector<16x256xbf16>
    %c0_6 = arith.constant 0 : index
    %c0_7 = arith.constant 0 : index
    %10 = vector.load %arg4[%c0_6, %c0_7] : memref<256x256xbf16, #tpu.memory_space<vmem>>, vector<256x256xbf16>
    %cst_8 = arith.constant dense<0.000000e+00> : vector<16x256xf32>
    %11 = tpu.matmul %9, %10, %cst_8 {dimension_numbers = #tpu.dot_dimension_numbers<[1], [0], [0], [1], [0, 0, 1, 1], [], []>} : vector<16x256xbf16>, vector<256x256xbf16>, vector<16x256xf32> -> vector<16x256xf32>
    %c0_9 = arith.constant 0 : index
    %c0_10 = arith.constant 0 : index
    %12 = vector.load %arg5[%c0_9, %c0_10] : memref<1x256xf32, #tpu.memory_space<vmem>>, vector<1x256xf32>
    %13 = vector.broadcast %12 : vector<1x256xf32> to vector<16x256xf32>
    %14 = arith.addf %11, %13 : vector<16x256xf32>
    %c0_11 = arith.constant 0 : index
    %c0_12 = arith.constant 0 : index
    %15 = vector.load %arg6[%c0_11, %c0_12] : memref<16x256xf32, #tpu.memory_space<vmem>>, vector<16x256xf32>
    tpu.vector_store %arg6[%c0_11, %c0_12], %14 {strides = array<i32>} : memref<16x256xf32, #tpu.memory_space<vmem>>, vector<16x256xf32>,
    return
  }
  func.func @transform_0(%arg0: i32) -> (i32, i32) {
    %c0_i32 = arith.constant 0 : i32
    %c0_i32_0 = arith.constant 0 : i32
    return %arg0, %c0_i32 : i32, i32
  }
  func.func @transform_1(%arg0: i32) -> (i32, i32) {
    %c0_i32 = arith.constant 0 : i32
    %c0_i32_0 = arith.constant 0 : i32
    %c0_i32_1 = arith.constant 0 : i32
    return %c0_i32, %c0_i32_0 : i32, i32
  }
  func.func @transform_2(%arg0: i32) -> (i32, i32) {
    %c0_i32 = arith.constant 0 : i32
    %c0_i32_0 = arith.constant 0 : i32
    %c0_i32_1 = arith.constant 0 : i32
    return %c0_i32, %c0_i32_0 : i32, i32
  }
  func.func @transform_3(%arg0: i32) -> (i32, i32) {
    %c0_i32 = arith.constant 0 : i32
    %c0_i32_0 = arith.constant 0 : i32
    %c0_i32_1 = arith.constant 0 : i32
    return %c0_i32, %c0_i32_0 : i32, i32
  }
  func.func @transform_4(%arg0: i32) -> (i32, i32) {
    %c0_i32 = arith.constant 0 : i32
    %c0_i32_0 = arith.constant 0 : i32
    %c0_i32_1 = arith.constant 0 : i32
    return %c0_i32, %c0_i32_0 : i32, i32
  }
  func.func @transform_5(%arg0: i32) -> (i32, i32) {
    %c0_i32 = arith.constant 0 : i32
    %c0_i32_0 = arith.constant 0 : i32
    return %arg0, %c0_i32 : i32, i32
  }
}

</mosaic_0001>

<bundles_post_ra>
// kernel: tpu_custom_call.1
= control target key start
LH: loop header
LB: loop body
LE: loop exit
PB: predicated region body
PF: predicated region fallthrough
CT: control target
= control target key end

     0   :  { %10 = vsyncpa [#allocation3], 0  ;;  %s1147_s0 = inlined_call_operand.hbm [shape: f32[16,256], index: 0, kind: input, shape index: {}]   ;;  %s1148_s1 = inlined_call_operand.hbm [shape: bf16[256,256], index: 1, kind: input, shape index: {}]   ;;  %s1149_s2 = inlined_call_operand.hbm [shape: f32[1,256], index: 2, kind: input, shape index: {}]   ;;  %s1150_s3 = inlined_call_operand.hbm [shape: bf16[256,256], index: 3, kind: input, shape index: {}]   ;;  %s1151_s4 = inlined_call_operand.vmem [shape: f32[1,256], index: 4, kind: input, shape index: {}]   ;;  %s1152_s5 = inlined_call_operand.hbm [shape: f32[16,256], index: 5, kind: output, shape index: {}]  }
   0x1   :  { %11 = vsyncpa [#allocation6], 0 }
   0x2   :  { %12 = vsyncpa [#allocation9], 0  ;;  %s31_s20 = sshll.u32 %s1148_s1, 4  ;;  %s32_s20 = int_to_ptr.hbm [resolvable:$true] %s31_s20 }
   0x3   :  { %13 = vsyncpa [#allocation4], 0  ;;  %s1084_s21 = smov [#allocation5]   ;;  %s18_s25 = sshll.u32 %s1147_s0, 4  ;;  %s19_s25 = int_to_ptr.hbm [resolvable:$true] %s18_s25 }
   0x4   :  { %s33_s22 = sshll.u32 %s1084_s21, 4  ;;  %s1085_s26 = smov 128   ;;  %s34_s22 = int_to_ptr.vmem [resolvable:$true] %s33_s22 }
   0x5   :  { %s1086_s27 = smov 8   ;;  %s1087_s28 = smov [#allocation2]  }
   0x6   :  { %39 = dma.hbm_to_vmem [thread:$0]  %s32_s20, 4096, %s34_s22, [#allocation6], %s1085_s26, %s1085_s26, %s1086_s27  }
   0x7   :  { %s20_s29 = sshll.u32 %s1087_s28, 4  ;;  %s1088_s30 = smov 256   ;;  %s21_s29 = int_to_ptr.vmem [resolvable:$true] %s20_s29 }
   0x8   :  { %s1089_s6 = smov 16   ;;  %s45_s8 = sshll.u32 %s1149_s2, 4  ;;  %s46_s8 = int_to_ptr.hbm [resolvable:$true] %s45_s8 }
   0x9   :  { %26 = dma.hbm_to_vmem [thread:$0]  %s19_s25, 512, %s21_s29, [#allocation3], %s1088_s30, %s1088_s30, %s1089_s6  }
   0xa   :  { %s1090_s9 = smov [#allocation7]   ;;  %s55_s12 = sshll.u32 %s1150_s3, 4  ;;  %s56_s12 = int_to_ptr.hbm [resolvable:$true] %s55_s12 }
   0xb   :  { %s47_s0 = sshll.u32 %s1090_s9, 4  ;;  %s1091_s13 = smov [#allocation8]   ;;  %s48_s0 = int_to_ptr.vmem [resolvable:$true] %s47_s0 }
   0xc   :  { %50 = dma.hbm_to_vmem [thread:$0]  %s46_s8, 32, %s48_s0, [#allocation6]  }
   0xd   :  { %s57_s14 = sshll.u32 %s1091_s13, 4  ;;  %s58_s14 = int_to_ptr.vmem [resolvable:$true] %s57_s14 }
   0xe   :  { %63 = dma.hbm_to_vmem [thread:$0]  %s56_s12, 4096, %s58_s14, [#allocation9], %s1085_s26, %s1085_s26, %s1086_s27  }
   0xf   :  { %1076 = dma.done.wait [#allocation3], 512  }
  0x10   :  { %1077 = vsyncadd [#allocation3], 4294966784 }
  0x11   :  { %1078 = dma.done.wait [#allocation6], 4128  }
  0x12   :  { %1079 = vsyncadd [#allocation6], 4294963168 }
  0x13   :  { %1080 = dma.done.wait [#allocation9], 4096  }
  0x14   :  { %1081 = vsyncadd [#allocation9], 4294963200  ;;  %v685_v0 = vld [vmem:[#allocation5 + $0x70] sm:$0xf]  ;;  %v898_v1 = vld [vmem:[#allocation5 + $0x74] sm:$0xf0] }
  0x15   :  { %v749_v2 = vld [vmem:[#allocation5 + $0xf0] sm:$0xf]  ;;  %v686_v3 = vor.u32 %v898_v1, %v685_v0  ;;  %v914_v4 = vld [vmem:[#allocation5 + $0xf4] sm:$0xf0]  ;;  %v897_v5 = vld [vmem:[#allocation5 + $0x74] sm:$0xf] }
  0x16   :  { %v687_v6 = vld [vmem:[#allocation5 + $0x78] sm:$0xf0]  ;;  %v750_v7 = vor.u32 %v914_v4, %v749_v2  ;;  %v913_v9 = vld [vmem:[#allocation5 + $0xf4] sm:$0xf]  ;;  %v677_v11 = vld [vmem:[#allocation5 + $0x60] sm:$0xf] }
  0x17   :  { %v690_v8 = vor.u32 %v897_v5, %v687_v6  ;;  %v751_v10 = vld [vmem:[#allocation5 + $0xf8] sm:$0xf0]  ;;  %286 = vmatpush.bf16.msra.mxu0 %v686_v3  ;;  %v896_v13 = vld [vmem:[#allocation5 + $0x64] sm:$0xf0]  ;;  %v741_v14 = vld [vmem:[#allocation5 + $0xe0] sm:$0xf] }
  0x18   :  { %v754_v12 = vor.u32 %v913_v9, %v751_v10  ;;  %v912_v15 = vld [vmem:[#allocation5 + $0xe4] sm:$0xf0]  ;;  %300 = vmatpush.bf16.msra.mxu1 %v750_v7  ;;  %v678_v16 = vor.u32 %v896_v13, %v677_v11  ;;  %v895_v18 = vld [vmem:[#allocation5 + $0x64] sm:$0xf]  ;;  %v679_v19 = vld [vmem:[#allocation5 + $0x68] sm:$0xf0] }
  0x19   :  { %314 = vmatpush.bf16.msra.mxu2 %v690_v8  ;;  %v742_v17 = vor.u32 %v912_v15, %v741_v14  ;;  %v911_v20 = vld [vmem:[#allocation5 + $0xe4] sm:$0xf]  ;;  %v682_v21 = vor.u32 %v895_v18, %v679_v19  ;;  %v743_v22 = vld [vmem:[#allocation5 + $0xe8] sm:$0xf0]  ;;  %v669_v23 = vld [vmem:[#allocation5 + $0x50] sm:$0xf] }
  0x1a   :  { %328 = vmatpush.bf16.msra.mxu3 %v754_v12  ;;  %v894_v24 = vld [vmem:[#allocation5 + $0x54] sm:$0xf0]  ;;  %v746_v25 = vor.u32 %v911_v20, %v743_v22  ;;  %v733_v26 = vld [vmem:[#allocation5 + $0xd0] sm:$0xf]  ;;  %v893_v28 = vld [vmem:[#allocation5 + $0x54] sm:$0xf] }
  0x1b   :  { %v910_v27 = vld [vmem:[#allocation5 + $0xd4] sm:$0xf0]  ;;  %287 = vmatpush.bf16.msra.mxu0 %v678_v16  ;;  %v670_v29 = vor.u32 %v894_v24, %v669_v23  ;;  %v671_v30 = vld [vmem:[#allocation5 + $0x58] sm:$0xf0]  ;;  %v909_v31 = vld [vmem:[#allocation5 + $0xd4] sm:$0xf] }
  0x1c   :  { %v735_v32 = vld [vmem:[#allocation5 + $0xd8] sm:$0xf0]  ;;  %301 = vmatpush.bf16.msra.mxu1 %v742_v17  ;;  %v734_v33 = vor.u32 %v910_v27, %v733_v26  ;;  %v674_v34 = vor.u32 %v893_v28, %v671_v30  ;;  %v661_v35 = vld [vmem:[#allocation5 + $0x40] sm:$0xf]  ;;  %v892_v36 = vld [vmem:[#allocation5 + $0x44] sm:$0xf0] }
  0x1d   :  { %315 = vmatpush.bf16.msra.mxu2 %v682_v21  ;;  %v725_v37 = vld [vmem:[#allocation5 + $0xc0] sm:$0xf]  ;;  %v738_v38 = vor.u32 %v909_v31, %v735_v32  ;;  %v908_v39 = vld [vmem:[#allocation5 + $0xc4] sm:$0xf0]  ;;  %v891_v40 = vld [vmem:[#allocation5 + $0x44] sm:$0xf]  ;;  %v662_v44 = vor.u32 %v892_v36, %v661_v35 }
  0x1e   :  { %329 = vmatpush.bf16.msra.mxu3 %v746_v25  ;;  %v663_v41 = vld [vmem:[#allocation5 + $0x48] sm:$0xf0]  ;;  %v907_v42 = vld [vmem:[#allocation5 + $0xc4] sm:$0xf]  ;;  %v726_v45 = vor.u32 %v908_v39, %v725_v37  ;;  %v653_v47 = vld [vmem:[#allocation5 + $0x30] sm:$0xf] }
  0x1f   :  { %v727_v43 = vld [vmem:[#allocation5 + $0xc8] sm:$0xf0]  ;;  %288 = vmatpush.bf16.msra.mxu0 %v670_v29  ;;  %v666_v46 = vor.u32 %v891_v40, %v663_v41  ;;  %v890_v48 = vld [vmem:[#allocation5 + $0x34] sm:$0xf0]  ;;  %v717_v49 = vld [vmem:[#allocation5 + $0xb0] sm:$0xf] }
  0x20   :  { %302 = vmatpush.bf16.msra.mxu1 %v734_v33  ;;  %v730_v50 = vor.u32 %v907_v42, %v727_v43  ;;  %v906_v51 = vld [vmem:[#allocation5 + $0xb4] sm:$0xf0]  ;;  %v889_v52 = vld [vmem:[#allocation5 + $0x34] sm:$0xf]  ;;  %v655_v53 = vld [vmem:[#allocation5 + $0x38] sm:$0xf0]  ;;  %v654_v56 = vor.u32 %v890_v48, %v653_v47 }
  0x21   :  { %316 = vmatpush.bf16.msra.mxu2 %v674_v34  ;;  %v905_v54 = vld [vmem:[#allocation5 + $0xb4] sm:$0xf]  ;;  %v719_v55 = vld [vmem:[#allocation5 + $0xb8] sm:$0xf0]  ;;  %v718_v57 = vor.u32 %v906_v51, %v717_v49  ;;  %v658_v58 = vor.u32 %v889_v52, %v655_v53  ;;  %v645_v59 = vld [vmem:[#allocation5 + $0x20] sm:$0xf] }
  0x22   :  { %330 = vmatpush.bf16.msra.mxu3 %v738_v38  ;;  %v888_v60 = vld [vmem:[#allocation5 + $0x24] sm:$0xf0]  ;;  %v709_v61 = vld [vmem:[#allocation5 + $0xa0] sm:$0xf]  ;;  %v722_v62 = vor.u32 %v905_v54, %v719_v55  ;;  %v887_v0 = vld [vmem:[#allocation5 + $0x24] sm:$0xf] }
  0x23   :  { %289 = vmatpush.bf16.msra.mxu0 %v662_v44  ;;  %v904_v63 = vld [vmem:[#allocation5 + $0xa4] sm:$0xf0]  ;;  %v647_v1 = vld [vmem:[#allocation5 + $0x28] sm:$0xf0]  ;;  %v903_v2 = vld [vmem:[#allocation5 + $0xa4] sm:$0xf]  ;;  %v646_v4 = vor.u32 %v888_v60, %v645_v59 }
  0x24   :  { %303 = vmatpush.bf16.msra.mxu1 %v726_v45  ;;  %v711_v3 = vld [vmem:[#allocation5 + $0xa8] sm:$0xf0]  ;;  %v710_v5 = vor.u32 %v904_v63, %v709_v61  ;;  %v650_v6 = vor.u32 %v887_v0, %v647_v1  ;;  %v637_v7 = vld [vmem:[#allocation5 + $0x10] sm:$0xf]  ;;  %v886_v8 = vld [vmem:[#allocation5 + $0x14] sm:$0xf0] }
  0x25   :  { %317 = vmatpush.bf16.msra.mxu2 %v666_v46  ;;  %v701_v9 = vld [vmem:[#allocation5 + $0x90] sm:$0xf]  ;;  %v714_v10 = vor.u32 %v903_v2, %v711_v3  ;;  %v902_v11 = vld [vmem:[#allocation5 + $0x94] sm:$0xf0]  ;;  %v885_v12 = vld [vmem:[#allocation5 + $0x14] sm:$0xf]  ;;  %v638_v16 = vor.u32 %v886_v8, %v637_v7 }
  0x26   :  { %331 = vmatpush.bf16.msra.mxu3 %v730_v50  ;;  %v639_v13 = vld [vmem:[#allocation5 + $0x18] sm:$0xf0]  ;;  %v901_v14 = vld [vmem:[#allocation5 + $0x94] sm:$0xf]  ;;  %v629_v17 = vld [vmem:[#allocation5] sm:$0xf]  ;;  %v702_v19 = vor.u32 %v902_v11, %v701_v9 }
  0x27   :  { %290 = vmatpush.bf16.msra.mxu0 %v654_v56  ;;  %v703_v15 = vld [vmem:[#allocation5 + $0x98] sm:$0xf0]  ;;  %v884_v18 = vld [vmem:[#allocation5 + $0x4] sm:$0xf0]  ;;  %v642_v20 = vor.u32 %v885_v12, %v639_v13  ;;  %v693_v21 = vld [vmem:[#allocation5 + $0x80] sm:$0xf] }
  0x28   :  { %304 = vmatpush.bf16.msra.mxu1 %v718_v57  ;;  %v900_v22 = vld [vmem:[#allocation5 + $0x84] sm:$0xf0]  ;;  %v883_v23 = vld [vmem:[#allocation5 + $0x4] sm:$0xf]  ;;  %v706_v24 = vor.u32 %v901_v14, %v703_v15  ;;  %v631_v25 = vld [vmem:[#allocation5 + $0x8] sm:$0xf0]  ;;  %v630_v31 = vor.u32 %v884_v18, %v629_v17 }
  0x29   :  { %318 = vmatpush.bf16.msra.mxu2 %v658_v58  ;;  %v899_v26 = vld [vmem:[#allocation5 + $0x84] sm:$0xf]  ;;  %v695_v27 = vld [vmem:[#allocation5 + $0x88] sm:$0xf0]  ;;  %v813_v29 = vld [vmem:[#allocation8 + $0x70] sm:$0xf]  ;;  %v694_v35 = vor.u32 %v900_v22, %v693_v21  ;;  %v634_v36 = vor.u32 %v883_v23, %v631_v25 }
  0x2a   :  { %332 = vmatpush.bf16.msra.mxu3 %v722_v62  ;;  %v82_v28 = vld [vmem:[#allocation2] sm:$0xff]  ;;  %v930_v30 = vld [vmem:[#allocation8 + $0x74] sm:$0xf0]  ;;  %v84_v32 = vld [vmem:[#allocation2 + $0x10] sm:$0xff]  ;;  %v698_v39 = vor.u32 %v899_v26, %v695_v27  ;;  %s1092_s15 = smov [#allocation10]   ;;  %s612_s18 = sshll.u32 %s1152_s5, 4  ;;  %s613_s18 = int_to_ptr.hbm [resolvable:$true] %s612_s18 }
  0x2b   :  { %291 = vmatpush.bf16.msra.mxu0 %v646_v4  ;;  %v929_v33 = vld [vmem:[#allocation8 + $0x74] sm:$0xf]  ;;  %v815_v34 = vld [vmem:[#allocation8 + $0x78] sm:$0xf0]  ;;  %v83_v37 = vld [vmem:[#allocation2 + $0x8] sm:$0xff]  ;;  %v814_v40 = vor.u32 %v930_v30, %v813_v29  ;;  %v86_v44 = vpack.c.bf16 %v84_v32, %v82_v28 }
  0x2c   :  { %305 = vmatpush.bf16.msra.mxu1 %v710_v5  ;;  %v85_v38 = vld [vmem:[#allocation2 + $0x18] sm:$0xff]  ;;  %v805_v41 = vld [vmem:[#allocation8 + $0x60] sm:$0xf]  ;;  %v877_v42 = vld [vmem:[#allocation8 + $0xf0] sm:$0xf]  ;;  %v818_v45 = vor.u32 %v929_v33, %v815_v34 }
  0x2d   :  { %319 = vmatpush.bf16.msra.mxu2 %v650_v6  ;;  %v946_v43 = vld [vmem:[#allocation8 + $0xf4] sm:$0xf0]  ;;  %v928_v46 = vld [vmem:[#allocation8 + $0x64] sm:$0xf0]  ;;  %v945_v47 = vld [vmem:[#allocation8 + $0xf4] sm:$0xf]  ;;  %v87_v49 = vpack.c.bf16 %v85_v38, %v83_v37 }
  0x2e   :  { %333 = vmatpush.bf16.msra.mxu3 %v714_v10  ;;  %v879_v48 = vld [vmem:[#allocation8 + $0xf8] sm:$0xf0]  ;;  %v927_v50 = vld [vmem:[#allocation8 + $0x64] sm:$0xf]  ;;  %v807_v51 = vld [vmem:[#allocation8 + $0x68] sm:$0xf0]  ;;  %v878_v52 = vor.u32 %v946_v43, %v877_v42  ;;  %v806_v53 = vor.u32 %v928_v46, %v805_v41 }
  0x2f   :  { %292 = vmatpush.bf16.msra.mxu0 %v638_v16  ;;  %v882_v54 = vor.u32 %v945_v47, %v879_v48  ;;  %v797_v55 = vld [vmem:[#allocation8 + $0x50] sm:$0xf]  ;;  %v869_v56 = vld [vmem:[#allocation8 + $0xe0] sm:$0xf]  ;;  %v944_v57 = vld [vmem:[#allocation8 + $0xe4] sm:$0xf0]  ;;  %v810_v58 = vor.u32 %v927_v50, %v807_v51 }
  0x30   :  { %306 = vmatpush.bf16.msra.mxu1 %v702_v19  ;;  %v926_v59 = vld [vmem:[#allocation8 + $0x54] sm:$0xf0]  ;;  %v943_v60 = vld [vmem:[#allocation8 + $0xe4] sm:$0xf]  ;;  %v871_v61 = vld [vmem:[#allocation8 + $0xe8] sm:$0xf0]  ;;  %v870_v0 = vor.u32 %v944_v57, %v869_v56 }
  0x31   :  { %320 = vmatpush.bf16.msra.mxu2 %v642_v20  ;;  %v925_v62 = vld [vmem:[#allocation8 + $0x54] sm:$0xf]  ;;  %v799_v63 = vld [vmem:[#allocation8 + $0x58] sm:$0xf0]  ;;  %v798_v1 = vor.u32 %v926_v59, %v797_v55  ;;  %v874_v2 = vor.u32 %v943_v60, %v871_v61  ;;  %v789_v4 = vld [vmem:[#allocation8 + $0x40] sm:$0xf] }
  0x32   :  { %334 = vmatpush.bf16.msra.mxu3 %v706_v24  ;;  %v802_v3 = vor.u32 %v925_v62, %v799_v63  ;;  %v924_v5 = vld [vmem:[#allocation8 + $0x44] sm:$0xf0]  ;;  %v923_v6 = vld [vmem:[#allocation8 + $0x44] sm:$0xf]  ;;  %v791_v7 = vld [vmem:[#allocation8 + $0x48] sm:$0xf0] }
  0x33   :  { %293 = vmatpush.bf16.msra.mxu0 %v630_v31  ;;  %v790_v8 = vor.u32 %v924_v5, %v789_v4  ;;  %v794_v9 = vor.u32 %v923_v6, %v791_v7  ;;  %v861_v10 = vld [vmem:[#allocation8 + $0xd0] sm:$0xf]  ;;  %v942_v11 = vld [vmem:[#allocation8 + $0xd4] sm:$0xf0]  ;;  %v941_v12 = vld [vmem:[#allocation8 + $0xd4] sm:$0xf] }
  0x34   :  { %307 = vmatpush.bf16.msra.mxu1 %v694_v35  ;;  %v862_v13 = vor.u32 %v942_v11, %v861_v10  ;;  %v863_v14 = vld [vmem:[#allocation8 + $0xd8] sm:$0xf0]  ;;  %v781_v16 = vld [vmem:[#allocation8 + $0x30] sm:$0xf]  ;;  %v922_v17 = vld [vmem:[#allocation8 + $0x34] sm:$0xf0] }
  0x35   :  { %321 = vmatpush.bf16.msra.mxu2 %v634_v36  ;;  %v866_v15 = vor.u32 %v941_v12, %v863_v14  ;;  %v921_v18 = vld [vmem:[#allocation8 + $0x34] sm:$0xf]  ;;  %v782_v19 = vor.u32 %v922_v17, %v781_v16  ;;  %v783_v20 = vld [vmem:[#allocation8 + $0x38] sm:$0xf0]  ;;  %v853_v22 = vld [vmem:[#allocation8 + $0xc0] sm:$0xf] }
  0x36   :  { %335 = vmatpush.bf16.msra.mxu3 %v698_v39  ;;  %294 = vmatmul.bf16.vlgmr.msra.gmra.mxu0 %v86_v44  ;;  %v786_v21 = vor.u32 %v921_v18, %v783_v20  ;;  %v940_v23 = vld [vmem:[#allocation8 + $0xc4] sm:$0xf0]  ;;  %v939_v24 = vld [vmem:[#allocation8 + $0xc4] sm:$0xf]  ;;  %v855_v26 = vld [vmem:[#allocation8 + $0xc8] sm:$0xf0] }
  0x37   :  { %546 = vmatpush.bf16.msrb.mxu0 %v814_v40  ;;  %308 = vmatmul.bf16.vlgmr.msra.gmra.mxu1 %v87_v49  ;;  %v854_v25 = vor.u32 %v940_v23, %v853_v22  ;;  %v858_v27 = vor.u32 %v939_v24, %v855_v26  ;;  %v773_v28 = vld [vmem:[#allocation8 + $0x20] sm:$0xf]  ;;  %v920_v29 = vld [vmem:[#allocation8 + $0x24] sm:$0xf0]  ;;  %v919_v31 = vld [vmem:[#allocation8 + $0x24] sm:$0xf] }
  0x38   :  { %322 = vmatmul.bf16.vlgmr.msra.gmra.mxu2 %v86_v44  ;;  %560 = vmatpush.bf16.msrb.mxu1 %v878_v52  ;;  %v774_v30 = vor.u32 %v920_v29, %v773_v28  ;;  %v775_v32 = vld [vmem:[#allocation8 + $0x28] sm:$0xf0]  ;;  %v845_v34 = vld [vmem:[#allocation8 + $0xb0] sm:$0xf]  ;;  %v938_v35 = vld [vmem:[#allocation8 + $0xb4] sm:$0xf0] }
  0x39   :  { %574 = vmatpush.bf16.msrb.mxu2 %v818_v45  ;;  %336 = vmatmul.bf16.vlgmr.msra.gmra.mxu3 %v87_v49  ;;  %v778_v33 = vor.u32 %v919_v31, %v775_v32  ;;  %v937_v36 = vld [vmem:[#allocation8 + $0xb4] sm:$0xf]  ;;  %v846_v37 = vor.u32 %v938_v35, %v845_v34  ;;  %v847_v38 = vld [vmem:[#allocation8 + $0xb8] sm:$0xf0]  ;;  %v765_v40 = vld [vmem:[#allocation8 + $0x10] sm:$0xf] }
  0x3a   :  { %588 = vmatpush.bf16.msrb.mxu3 %v882_v54  ;;  %v850_v39 = vor.u32 %v937_v36, %v847_v38  ;;  %v918_v41 = vld [vmem:[#allocation8 + $0x14] sm:$0xf0]  ;;  %v917_v42 = vld [vmem:[#allocation8 + $0x14] sm:$0xf]  ;;  %v767_v44 = vld [vmem:[#allocation8 + $0x18] sm:$0xf0] }
  0x3b   :  { %547 = vmatpush.bf16.msrb.mxu0 %v806_v53  ;;  %v766_v43 = vor.u32 %v918_v41, %v765_v40  ;;  %v770_v45 = vor.u32 %v917_v42, %v767_v44  ;;  %v837_v46 = vld [vmem:[#allocation8 + $0xa0] sm:$0xf]  ;;  %v936_v47 = vld [vmem:[#allocation8 + $0xa4] sm:$0xf0]  ;;  %v935_v48 = vld [vmem:[#allocation8 + $0xa4] sm:$0xf] }
  0x3c   :  { %561 = vmatpush.bf16.msrb.mxu1 %v870_v0  ;;  %v838_v49 = vor.u32 %v936_v47, %v837_v46  ;;  %v839_v50 = vld [vmem:[#allocation8 + $0xa8] sm:$0xf0]  ;;  %v757_v52 = vld [vmem:[#allocation8] sm:$0xf]  ;;  %v916_v53 = vld [vmem:[#allocation8 + $0x4] sm:$0xf0] }
  0x3d   :  { %575 = vmatpush.bf16.msrb.mxu2 %v810_v58  ;;  %v842_v51 = vor.u32 %v935_v48, %v839_v50  ;;  %v915_v54 = vld [vmem:[#allocation8 + $0x4] sm:$0xf]  ;;  %v758_v55 = vor.u32 %v916_v53, %v757_v52  ;;  %v759_v56 = vld [vmem:[#allocation8 + $0x8] sm:$0xf0]  ;;  %v829_v58 = vld [vmem:[#allocation8 + $0x90] sm:$0xf] }
  0x3e   :  { %589 = vmatpush.bf16.msrb.mxu3 %v874_v2  ;;  %v762_v57 = vor.u32 %v915_v54, %v759_v56  ;;  %v934_v59 = vld [vmem:[#allocation8 + $0x94] sm:$0xf0]  ;;  %v933_v60 = vld [vmem:[#allocation8 + $0x94] sm:$0xf]  ;;  %v831_v62 = vld [vmem:[#allocation8 + $0x98] sm:$0xf0] }
  0x3f   :  { %548 = vmatpush.bf16.msrb.mxu0 %v798_v1  ;;  %v830_v61 = vor.u32 %v934_v59, %v829_v58  ;;  %v834_v63 = vor.u32 %v933_v60, %v831_v62  ;;  %v821_v0 = vld [vmem:[#allocation8 + $0x80] sm:$0xf]  ;;  %v932_v1 = vld [vmem:[#allocation8 + $0x84] sm:$0xf0]  ;;  %v931_v2 = vld [vmem:[#allocation8 + $0x84] sm:$0xf] }
  0x40   :  { %562 = vmatpush.bf16.msrb.mxu1 %v862_v13  ;;  %v823_v4 = vld [vmem:[#allocation8 + $0x88] sm:$0xf0]  ;;  %v120_v6 = vld [vmem:[#allocation7] sm:$0x3] }
  0x41   :  { %576 = vmatpush.bf16.msrb.mxu2 %v802_v3  ;;  %v822_v3 = vor.u32 %v932_v1, %v821_v0  ;;  %v826_v5 = vor.u32 %v931_v2, %v823_v4  ;;  %v123_v12 = vperm.slane %v120_v6, 1  ;;  %v380_v31 = vld [vmem:[%s1151_s4] sm:$0x3]  ;;  %s610_s4 = sshll.u32 %s1092_s15, 4  ;;  %s611_s4 = int_to_ptr.vmem [resolvable:$true] %s610_s4 }
  0x42   :  { %590 = vmatpush.bf16.msrb.mxu3 %v866_v15  ;;  %v383_v38 = vperm.slane %v380_v31, 1 }
  0x43   :  { %549 = vmatpush.bf16.msrb.mxu0 %v790_v8  ;;  %v122_v8 = vperm.slane %v120_v6, 0 }
  0x44   :  { %563 = vmatpush.bf16.msrb.mxu1 %v854_v25 }
  0x45   :  { %577 = vmatpush.bf16.msrb.mxu2 %v794_v9 }
  0x46   :  { %591 = vmatpush.bf16.msrb.mxu3 %v858_v27 }
  0x47   :  { %550 = vmatpush.bf16.msrb.mxu0 %v782_v19 }
  0x48   :  { %564 = vmatpush.bf16.msrb.mxu1 %v846_v37 }
  0x49   :  { %578 = vmatpush.bf16.msrb.mxu2 %v786_v21 }
  0x4a   :  { %592 = vmatpush.bf16.msrb.mxu3 %v850_v39 }
  0x4b   :  { %551 = vmatpush.bf16.msrb.mxu0 %v774_v30 }
  0x4c   :  { %565 = vmatpush.bf16.msrb.mxu1 %v838_v49 }
  0x4d   :  { %579 = vmatpush.bf16.msrb.mxu2 %v778_v33  ;;  %v382_v33 = vperm.slane %v380_v31, 0 }
  0x4e   :  { %593 = vmatpush.bf16.msrb.mxu3 %v842_v51 }
  0x4f   :  { %552 = vmatpush.bf16.msrb.mxu0 %v766_v43 }
  0x50   :  { %566 = vmatpush.bf16.msrb.mxu1 %v830_v61 }
  0x51   :  { %580 = vmatpush.bf16.msrb.mxu2 %v770_v45 }
  0x52   :  { %594 = vmatpush.bf16.msrb.mxu3 %v834_v63 }
  0x53   :  { %553 = vmatpush.bf16.msrb.mxu0 %v758_v55 }
  0x54   :  { %567 = vmatpush.bf16.msrb.mxu1 %v822_v3 }
  0x55   :  { %581 = vmatpush.bf16.msrb.mxu2 %v762_v57 }
  0x56   :  { %595 = vmatpush.bf16.msrb.mxu3 %v826_v5 }
  0xb3   :  { %v295_v7 = vpop.f32.mrf.mxu0 }
  0xb4   :  { %v309_v9 = vpop.f32.mrf.mxu1  ;;  %v296_v10 = vadd.f32 %v295_v7, %v122_v8 }
  0xb6   :  { %v310_v15 = vadd.f32 %v309_v9, %v296_v10 }
  0xb8   :  { %v342_v20 = vmax.f32 %v310_v15, 0.0 }
  0xbb   :  { %v323_v11 = vpop.f32.mrf.mxu2  ;;  %v297_v14 = vpop.f32.mrf.mxu0 }
  0xbc   :  { %v337_v13 = vpop.f32.mrf.mxu3  ;;  %v298_v16 = vadd.f32 %v297_v14, %v122_v8  ;;  %v311_v17 = vpop.f32.mrf.mxu1  ;;  %v324_v19 = vadd.f32 %v323_v11, %v123_v12 }
  0xbe   :  { %v312_v18 = vadd.f32 %v311_v17, %v298_v16  ;;  %v338_v24 = vadd.f32 %v337_v13, %v324_v19 }
  0xc0   :  { %v344_v21 = vmax.f32 %v312_v18, 0.0  ;;  %v343_v28 = vmax.f32 %v338_v24, 0.0 }
  0xc2   :  { %v346_v22 = vpack.c.bf16 %v344_v21, %v342_v20 }
  0xc3   :  { %v325_v23 = vpop.f32.mrf.mxu2 }
  0xc4   :  { %v326_v25 = vadd.f32 %v325_v23, %v123_v12  ;;  %v339_v26 = vpop.f32.mrf.mxu3  ;;  %554 = vmatmul.bf16.vlgmr.msrb.gmra.mxu0 %v346_v22  ;;  %582 = vmatmul.bf16.vlgmr.msrb.gmra.mxu2 %v346_v22 }
  0xc6   :  { %v340_v27 = vadd.f32 %v339_v26, %v326_v25 }
  0xc8   :  { %v345_v29 = vmax.f32 %v340_v27, 0.0 }
  0xca   :  { %v347_v30 = vpack.c.bf16 %v345_v29, %v343_v28 }
  0xcc   :  { %568 = vmatmul.bf16.vlgmr.msrb.gmra.mxu1 %v347_v30  ;;  %596 = vmatmul.bf16.vlgmr.msrb.gmra.mxu3 %v347_v30 }
 0x141   :  { %v555_v32 = vpop.f32.mrf.mxu0 }
 0x142   :  { %v556_v34 = vadd.f32 %v555_v32, %v382_v33 }
 0x147   :  { %v583_v36 = vpop.f32.mrf.mxu2 }
 0x148   :  { %v584_v40 = vadd.f32 %v583_v36, %v383_v38 }
 0x149   :  { %v569_v35 = vpop.f32.mrf.mxu1  ;;  %v557_v39 = vpop.f32.mrf.mxu0 }
 0x14a   :  { %v570_v37 = vadd.f32 %v569_v35, %v556_v34  ;;  %v558_v42 = vadd.f32 %v557_v39, %v382_v33 }
 0x14c   :  { %602 = vst [vmem:[#allocation10] sm:$0xff] %v570_v37 }
 0x14f   :  { %v597_v41 = vpop.f32.mrf.mxu3  ;;  %v585_v46 = vpop.f32.mrf.mxu2 }
 0x150   :  { %v598_v43 = vadd.f32 %v597_v41, %v584_v40  ;;  %v586_v47 = vadd.f32 %v585_v46, %v383_v38 }
 0x151   :  { %v571_v44 = vpop.f32.mrf.mxu1 }
 0x152   :  { %603 = vst [vmem:[#allocation10 + $0x8] sm:$0xff] %v598_v43  ;;  %v572_v45 = vadd.f32 %v571_v44, %v558_v42 }
 0x154   :  { %604 = vst [vmem:[#allocation10 + $0x10] sm:$0xff] %v572_v45 }
 0x157   :  { %v599_v48 = vpop.f32.mrf.mxu3 }
 0x158   :  { %v600_v49 = vadd.f32 %v599_v48, %v586_v47 }
 0x15a   :  { %605 = vst [vmem:[#allocation10 + $0x18] sm:$0xff] %v600_v49 }
 0x15b   :  { %618 = dma.vmem_to_hbm [thread:$0]  %s611_s4, 512, %s613_s18, [#allocation4], %s1088_s30, %s1088_s30, %s1089_s6  }
 0x15c   :  { %1082 = dma.done.wait [#allocation4], 512  }
 0x15d   :  { %1083 = vsyncadd [#allocation4], 4294966784 }
 0x15e   :  { %623 = vsyncpa [#allocation3], 1 }
 0x15f   :  { %624 = vsyncpa [#allocation6], 1 }
 0x160   :  { %625 = vsyncpa [#allocation9], 1 }
 0x161   :  { %626 = vsyncpa [#allocation4], 1 }

</bundles_post_ra>
